<compile_context>
chip_gen: v6e
topology: v6e:2x2x1
jax: 0.10.0
libtpu: 0.0.40
codegen_flags: <defaults>
</compile_context>

<pallas_src>
import functools

import jax
import jax.numpy as jnp
from jax.experimental import pallas as pl
from jax.experimental.pallas import tpu as pltpu

EPS = 1e-5
LANE = 128


def _round_up(n, m):
    return ((n + m - 1) // m) * m


def _pad2(a, rows, cols):
    return jnp.pad(a, ((0, rows - a.shape[0]), (0, cols - a.shape[1])))


# --------------------------------------------------------------------------
# Kernel: one layer = (x @ W) accumulated over K tiles, epilogue applies
# bias (+ optionally folded BatchNorm + ReLU) and writes the output tile.
# --------------------------------------------------------------------------
def _layer_kernel(x_ref, w_ref, p_ref, o_ref, acc_ref, *, bn_relu):
    k = pl.program_id(1)

    @pl.when(k == 0)
    def _init():
        acc_ref[...] = jnp.zeros_like(acc_ref)

    acc_ref[...] += jnp.dot(x_ref[...], w_ref[...],
                            preferred_element_type=jnp.float32)

    @pl.when(k == pl.num_programs(1) - 1)
    def _epilogue():
        # p_ref rows: 0 = bias, 1 = gamma, 2 = beta   (all f32, (3, tn))
        h = acc_ref[...] + p_ref[0:1, :]
        if bn_relu:
            mean = jnp.mean(h, axis=0, keepdims=True)
            diff = h - mean
            var = jnp.mean(diff * diff, axis=0, keepdims=True)
            # Fold BN affine into one scale/shift -> single (B, N) mul + add.
            scale = p_ref[1:2, :] * jax.lax.rsqrt(var + EPS)
            shift = p_ref[2:3, :] - mean * scale
            h = jnp.maximum(h * scale + shift, 0.0)
        o_ref[...] = h.astype(o_ref.dtype)


def _linear_layer(x, w, p, *, bn_relu, out_dtype):
    """x: (B, K) bf16, w: (K, N) bf16, p: (3, N) f32. K, N multiples of 128."""
    B, K = x.shape
    Kw, N = w.shape
    assert K == Kw and K % LANE == 0 and N % LANE == 0

    # 256-wide tiles when divisible (good for v6e/v7x MXU), else 128 (v5e ok).
    tk = 256 if K % 256 == 0 else 128
    tn = 256 if N % 256 == 0 else 128
    grid = (N // tn, K // tk)

    out_itemsize = jnp.dtype(out_dtype).itemsize
    flops = 2 * B * K * N
    bytes_accessed = ((N // tn) * B * K * x.dtype.itemsize      # x re-read per N tile
                      + K * N * w.dtype.itemsize                # weights
                      + 3 * N * 4                               # bias/gamma/beta
                      + B * N * out_itemsize)                   # output
    cost = pl.CostEstimate(flops=flops,
                           transcendentals=N if bn_relu else 0,
                           bytes_accessed=bytes_accessed)

    # Resident footprint: double-buffered inputs/output + f32 accumulator.
    live = (2 * (B * tk * x.dtype.itemsize
                 + tk * tn * w.dtype.itemsize
                 + 3 * tn * 4
                 + B * tn * out_itemsize)
            + B * tn * 4)
    # Default scoped limit (32 MiB) already fits v7x's 64 MiB physical VMEM;
    # only raise beyond it if the footprint actually demands it.
    vmem_limit = max(2 * live, 32 * 1024 * 1024)

    kernel = functools.partial(_layer_kernel, bn_relu=bn_relu)

    return pl.pallas_call(
        kernel,
        out_shape=jax.ShapeDtypeStruct((B, N), out_dtype),
        grid_spec=pltpu.PrefetchScalarGridSpec(
            num_scalar_prefetch=0,
            grid=grid,
            in_specs=[
                pl.BlockSpec((B, tk), lambda n, k: (0, k)),
                pl.BlockSpec((tk, tn), lambda n, k: (k, n)),
                pl.BlockSpec((3, tn), lambda n, k: (0, n)),
            ],
            out_specs=pl.BlockSpec((B, tn), lambda n, k: (0, n)),
            scratch_shapes=[pltpu.VMEM((B, tn), jnp.float32)],
        ),
        compiler_params=pltpu.CompilerParams(
            dimension_semantics=("parallel", "arbitrary"),
            vmem_limit_bytes=int(vmem_limit),
        ),
        cost_estimate=cost,
    )(x, w, p)


# --------------------------------------------------------------------------
# Wrapper: pad feature dims to lane-dense multiples of 128, run 3 layers,
# slice the real out_dim back out.
# --------------------------------------------------------------------------
@functools.partial(jax.jit, static_argnames=("out_dim",))
def batch_net_forward(x, packed_params, out_dim):
    w1, p1, w2, p2, w3, p3 = packed_params
    B, in_dim = x.shape
    Kp = w1.shape[0]
    xp = _pad2(x, B, Kp).astype(jnp.bfloat16)

    h1 = _linear_layer(xp, w1, p1, bn_relu=True, out_dtype=jnp.bfloat16)
    h2 = _linear_layer(h1, w2, p2, bn_relu=True, out_dtype=jnp.bfloat16)
    out = _linear_layer(h2, w3, p3, bn_relu=False, out_dtype=jnp.float32)
    return out[:, :out_dim]


# --------------------------------------------------------------------------
# Parameter construction (PyTorch-default init) and lane-dense packing.
# --------------------------------------------------------------------------
def init_params(key, in_dim, n_hidden_1, n_hidden_2, out_dim):
    ks = jax.random.split(key, 6)

    def linear(kw, kb, fan_in, fan_out):
        bound = 1.0 / jnp.sqrt(float(fan_in))
        w = jax.random.uniform(kw, (fan_in, fan_out), jnp.float32, -bound, bound)
        b = jax.random.uniform(kb, (1, fan_out), jnp.float32, -bound, bound)
        return w, b

    w1, b1 = linear(ks[0], ks[1], in_dim, n_hidden_1)
    w2, b2 = linear(ks[2], ks[3], n_hidden_1, n_hidden_2)
    w3, b3 = linear(ks[4], ks[5], n_hidden_2, out_dim)

    g1 = jnp.ones((1, n_hidden_1), jnp.float32)
    be1 = jnp.zeros((1, n_hidden_1), jnp.float32)
    g2 = jnp.ones((1, n_hidden_2), jnp.float32)
    be2 = jnp.zeros((1, n_hidden_2), jnp.float32)

    return (w1, b1, g1, be1, w2, b2, g2, be2, w3, b3)


def pack_params(params):
    """Zero-pad feature dims to multiples of 128, cast weights to bf16 and
    pack (bias, gamma, beta) into one (3, N) f32 array per layer."""
    (w1, b1, g1, be1, w2, b2, g2, be2, w3, b3) = params

    def pack_layer(w, b, g, be):
        K, N = w.shape
        Kp, Np = _round_up(K, LANE), _round_up(N, LANE)
        wp = _pad2(w, Kp, Np).astype(jnp.bfloat16)
        p = jnp.concatenate(
            [_pad2(b, 1, Np), _pad2(g, 1, Np), _pad2(be, 1, Np)], axis=0
        ).astype(jnp.float32)
        return wp, p

    w1p, p1 = pack_layer(w1, b1, g1, be1)
    w2p, p2 = pack_layer(w2, b2, g2, be2)
    # Layer 3 has no BN: gamma/beta rows are dummies (kernel ignores them).
    w3p, p3 = pack_layer(w3, b3, jnp.ones_like(b3), jnp.zeros_like(b3))
    return (w1p, p1, w2p, p2, w3p, p3)


# --------------------------------------------------------------------------
# References.
# --------------------------------------------------------------------------
def reference_forward_f32(x, params):
    """Exact PyTorch semantics (training-mode BatchNorm1d), all f32."""
    (w1, b1, g1, be1, w2, b2, g2, be2, w3, b3) = params

    def layer(h, w, b, g, be):
        h = h @ w + b
        m = h.mean(axis=0, keepdims=True)
        v = ((h - m) ** 2).mean(axis=0, keepdims=True)
        return jnp.maximum((h - m) / jnp.sqrt(v + EPS) * g + be, 0.0)

    h = layer(x, w1, b1, g1, be1)
    h = layer(h, w2, b2, g2, be2)
    return h @ w3 + b3


def reference_forward_matched(x, params):
    """Same math path as the kernels: bf16 MXU inputs, f32 accumulate,
    folded BN scale/shift, bf16 inter-layer activations."""
    (w1, b1, g1, be1, w2, b2, g2, be2, w3, b3) = params

    def dot(a, w):
        return jnp.dot(a.astype(jnp.bfloat16), w.astype(jnp.bfloat16),
                       preferred_element_type=jnp.float32)

    def layer(h, w, b, g, be):
        h = dot(h, w) + b
        m = jnp.mean(h, axis=0, keepdims=True)
        d = h - m
        v = jnp.mean(d * d, axis=0, keepdims=True)
        scale = g * jax.lax.rsqrt(v + EPS)
        shift = be - m * scale
        return jnp.maximum(h * scale + shift, 0.0).astype(jnp.bfloat16)

    h = layer(x, w1, b1, g1, be1)
    h = layer(h, w2, b2, g2, be2)
    return dot(h, w3) + b3


if __name__ == "__main__":
    key = jax.random.PRNGKey(0)
    k_x, k_p = jax.random.split(key)

    # Small shapes consistent with the module's 2D (B, in_dim) forward.
    B, in_dim, n_hidden_1, n_hidden_2, out_dim = 8, 32, 64, 32, 16

    x = jax.random.normal(k_x, (B, in_dim), jnp.float32)
    params = init_params(k_p, in_dim, n_hidden_1, n_hidden_2, out_dim)
    packed = pack_params(params)

    out = batch_net_forward(x, packed, out_dim)
    jax.block_until_ready(out)

    assert out.shape == (B, out_dim)

    ref_matched = reference_forward_matched(x, params)
    ref_f32 = reference_forward_f32(x, params)
    assert jnp.allclose(out, ref_matched, atol=5e-3, rtol=5e-3), "matched-path mismatch"
    assert jnp.allclose(out, ref_f32, atol=5e-2, rtol=5e-2), "f32 semantic mismatch"

    print("KERNEL_OK")
</pallas_src>

<mosaic_0001>
module attributes {stable_mosaic.version = 11 : i64} {
  func.func @_layer_kernel(%arg0: i32, %arg1: i32, %arg2: memref<8x128xbf16, #tpu.memory_space<vmem>>, %arg3: memref<128x128xbf16, #tpu.memory_space<vmem>>, %arg4: memref<3x128xf32, #tpu.memory_space<vmem>>, %arg5: memref<8x128xbf16, #tpu.memory_space<vmem>>, %arg6: memref<8x128xf32, #tpu.memory_space<vmem>>) attributes {dimension_semantics = [#tpu.dimension_semantics<parallel>, #tpu.dimension_semantics<arbitrary>], iteration_bounds = array<i64: 1, 1>, scalar_prefetch = 0 : i64, scratch_operands = 1 : i64, tpu.core_type = #tpu.core_type<tc>, window_params = [{transform_indices = @transform_0, window_bounds = array<i64: 8, 128>}, {transform_indices = @transform_1, window_bounds = array<i64: 128, 128>}, {transform_indices = @transform_2, window_bounds = array<i64: 3, 128>}, {transform_indices = @transform_3, window_bounds = array<i64: 8, 128>}]} {
    %c0_i32 = arith.constant 0 : i32
    %0 = arith.cmpi eq, %arg1, %c0_i32 : i32
    %1 = arith.extui %0 : i1 to i32
    %c0_i32_0 = arith.constant 0 : i32
    %2 = arith.cmpi ne, %1, %c0_i32_0 : i32
    scf.if %2 {
      %cst_10 = arith.constant 0.000000e+00 : f32
      %12 = vector.broadcast %cst_10 : f32 to vector<8x128xf32>
      %c0_11 = arith.constant 0 : index
      %c0_12 = arith.constant 0 : index
      %13 = vector.load %arg6[%c0_11, %c0_12] : memref<8x128xf32, #tpu.memory_space<vmem>>, vector<8x128xf32>
      tpu.vector_store %arg6[%c0_11, %c0_12], %12 {strides = array<i32>} : memref<8x128xf32, #tpu.memory_space<vmem>>, vector<8x128xf32>,
    } else {
    }
    %c0 = arith.constant 0 : index
    %c0_1 = arith.constant 0 : index
    %3 = vector.load %arg6[%c0, %c0_1] : memref<8x128xf32, #tpu.memory_space<vmem>>, vector<8x128xf32>
    %c0_2 = arith.constant 0 : index
    %c0_3 = arith.constant 0 : index
    %4 = vector.load %arg2[%c0_2, %c0_3] : memref<8x128xbf16, #tpu.memory_space<vmem>>, vector<8x128xbf16>
    %c0_4 = arith.constant 0 : index
    %c0_5 = arith.constant 0 : index
    %5 = vector.load %arg3[%c0_4, %c0_5] : memref<128x128xbf16, #tpu.memory_space<vmem>>, vector<128x128xbf16>
    %cst = arith.constant dense<0.000000e+00> : vector<8x128xf32>
    %6 = tpu.matmul %4, %5, %cst {dimension_numbers = #tpu.dot_dimension_numbers<[1], [0], [0], [1], [0, 0, 1, 1], [], []>} : vector<8x128xbf16>, vector<128x128xbf16>, vector<8x128xf32> -> vector<8x128xf32>
    %7 = arith.addf %3, %6 : vector<8x128xf32>
    %c0_6 = arith.constant 0 : index
    %c0_7 = arith.constant 0 : index
    %8 = vector.load %arg6[%c0_6, %c0_7] : memref<8x128xf32, #tpu.memory_space<vmem>>, vector<8x128xf32>
    tpu.vector_store %arg6[%c0_6, %c0_7], %7 {strides = array<i32>} : memref<8x128xf32, #tpu.memory_space<vmem>>, vector<8x128xf32>,
    %c0_i32_8 = arith.constant 0 : i32
    %9 = arith.cmpi eq, %arg1, %c0_i32_8 : i32
    %10 = arith.extui %9 : i1 to i32
    %c0_i32_9 = arith.constant 0 : i32
    %11 = arith.cmpi ne, %10, %c0_i32_9 : i32
    scf.if %11 {
      %c0_10 = arith.constant 0 : index
      %c0_11 = arith.constant 0 : index
      %12 = vector.load %arg6[%c0_10, %c0_11] : memref<8x128xf32, #tpu.memory_space<vmem>>, vector<8x128xf32>
      %c0_12 = arith.constant 0 : index
      %c0_13 = arith.constant 0 : index
      %13 = vector.load %arg4[%c0_12, %c0_13] : memref<3x128xf32, #tpu.memory_space<vmem>>, vector<1x128xf32>
      %14 = vector.broadcast %13 : vector<1x128xf32> to vector<8x128xf32>
      %15 = arith.addf %12, %14 : vector<8x128xf32>
      %cst_14 = arith.constant dense<0.000000e+00> : vector<128xf32>
      %16 = vector.multi_reduction <add>, %15, %cst_14 [0] : vector<8x128xf32> to vector<128xf32>
      %17 = vector.shape_cast %16 : vector<128xf32> to vector<1x128xf32>
      %cst_15 = arith.constant 8.000000e+00 : f32
      %18 = vector.broadcast %cst_15 : f32 to vector<1x128xf32>
      %19 = arith.divf %17, %18 : vector<1x128xf32>
      %20 = vector.broadcast %19 : vector<1x128xf32> to vector<8x128xf32>
      %21 = arith.subf %15, %20 : vector<8x128xf32>
      %22 = arith.mulf %21, %21 : vector<8x128xf32>
      %cst_16 = arith.constant dense<0.000000e+00> : vector<128xf32>
      %23 = vector.multi_reduction <add>, %22, %cst_16 [0] : vector<8x128xf32> to vector<128xf32>
      %24 = vector.shape_cast %23 : vector<128xf32> to vector<1x128xf32>
      %cst_17 = arith.constant 8.000000e+00 : f32
      %25 = vector.broadcast %cst_17 : f32 to vector<1x128xf32>
      %26 = arith.divf %24, %25 : vector<1x128xf32>
      %c1 = arith.constant 1 : index
      %c0_18 = arith.constant 0 : index
      %27 = vector.load %arg4[%c1, %c0_18] : memref<3x128xf32, #tpu.memory_space<vmem>>, vector<1x128xf32>
      %cst_19 = arith.constant 9.99999974E-6 : f32
      %28 = vector.broadcast %cst_19 : f32 to vector<1x128xf32>
      %29 = arith.addf %26, %28 : vector<1x128xf32>
      %30 = math.rsqrt %29 : vector<1x128xf32>
      %31 = arith.mulf %27, %30 : vector<1x128xf32>
      %c2 = arith.constant 2 : index
      %c0_20 = arith.constant 0 : index
      %32 = vector.load %arg4[%c2, %c0_20] : memref<3x128xf32, #tpu.memory_space<vmem>>, vector<1x128xf32>
      %33 = arith.mulf %19, %31 : vector<1x128xf32>
      %34 = arith.subf %32, %33 : vector<1x128xf32>
      %35 = vector.broadcast %31 : vector<1x128xf32> to vector<8x128xf32>
      %36 = arith.mulf %15, %35 : vector<8x128xf32>
      %37 = vector.broadcast %34 : vector<1x128xf32> to vector<8x128xf32>
      %38 = arith.addf %36, %37 : vector<8x128xf32>
      %cst_21 = arith.constant 0.000000e+00 : f32
      %39 = vector.broadcast %cst_21 : f32 to vector<8x128xf32>
      %40 = arith.maximumf %38, %39 : vector<8x128xf32>
      %41 = arith.truncf %40 : vector<8x128xf32> to vector<8x128xbf16>
      %c0_22 = arith.constant 0 : index
      %c0_23 = arith.constant 0 : index
      %42 = vector.load %arg5[%c0_22, %c0_23] : memref<8x128xbf16, #tpu.memory_space<vmem>>, vector<8x128xbf16>
      tpu.vector_store %arg5[%c0_22, %c0_23], %41 {strides = array<i32>} : memref<8x128xbf16, #tpu.memory_space<vmem>>, vector<8x128xbf16>,
    } else {
    }
    return
  }
  func.func @transform_0(%arg0: i32, %arg1: i32) -> (i32, i32) {
    %c0_i32 = arith.constant 0 : i32
    %c0_i32_0 = arith.constant 0 : i32
    return %c0_i32, %arg1 : i32, i32
  }
  func.func @transform_1(%arg0: i32, %arg1: i32) -> (i32, i32) {
    %c0_i32 = arith.constant 0 : i32
    return %arg1, %arg0 : i32, i32
  }
  func.func @transform_2(%arg0: i32, %arg1: i32) -> (i32, i32) {
    %c0_i32 = arith.constant 0 : i32
    %c0_i32_0 = arith.constant 0 : i32
    return %c0_i32, %arg0 : i32, i32
  }
  func.func @transform_3(%arg0: i32, %arg1: i32) -> (i32, i32) {
    %c0_i32 = arith.constant 0 : i32
    %c0_i32_0 = arith.constant 0 : i32
    return %c0_i32, %arg0 : i32, i32
  }
}

module attributes {stable_mosaic.version = 11 : i64} {
  func.func @_layer_kernel(%arg0: i32, %arg1: i32, %arg2: memref<8x128xbf16, #tpu.memory_space<vmem>>, %arg3: memref<128x128xbf16, #tpu.memory_space<vmem>>, %arg4: memref<3x128xf32, #tpu.memory_space<vmem>>, %arg5: memref<8x128xbf16, #tpu.memory_space<vmem>>, %arg6: memref<8x128xf32, #tpu.memory_space<vmem>>) attributes {dimension_semantics = [#tpu.dimension_semantics<parallel>, #tpu.dimension_semantics<arbitrary>], iteration_bounds = array<i64: 1, 1>, scalar_prefetch = 0 : i64, scratch_operands = 1 : i64, tpu.core_type = #tpu.core_type<tc>, window_params = [{transform_indices = @transform_0, window_bounds = array<i64: 8, 128>}, {transform_indices = @transform_1, window_bounds = array<i64: 128, 128>}, {transform_indices = @transform_2, window_bounds = array<i64: 3, 128>}, {transform_indices = @transform_3, window_bounds = array<i64: 8, 128>}]} {
    %c0_i32 = arith.constant 0 : i32
    %0 = arith.cmpi eq, %arg1, %c0_i32 : i32
    %1 = arith.extui %0 : i1 to i32
    %c0_i32_0 = arith.constant 0 : i32
    %2 = arith.cmpi ne, %1, %c0_i32_0 : i32
    scf.if %2 {
      %cst_10 = arith.constant 0.000000e+00 : f32
      %12 = vector.broadcast %cst_10 : f32 to vector<8x128xf32>
      %c0_11 = arith.constant 0 : index
      %c0_12 = arith.constant 0 : index
      %13 = vector.load %arg6[%c0_11, %c0_12] : memref<8x128xf32, #tpu.memory_space<vmem>>, vector<8x128xf32>
      tpu.vector_store %arg6[%c0_11, %c0_12], %12 {strides = array<i32>} : memref<8x128xf32, #tpu.memory_space<vmem>>, vector<8x128xf32>,
    } else {
    }
    %c0 = arith.constant 0 : index
    %c0_1 = arith.constant 0 : index
    %3 = vector.load %arg6[%c0, %c0_1] : memref<8x128xf32, #tpu.memory_space<vmem>>, vector<8x128xf32>
    %c0_2 = arith.constant 0 : index
    %c0_3 = arith.constant 0 : index
    %4 = vector.load %arg2[%c0_2, %c0_3] : memref<8x128xbf16, #tpu.memory_space<vmem>>, vector<8x128xbf16>
    %c0_4 = arith.constant 0 : index
    %c0_5 = arith.constant 0 : index
    %5 = vector.load %arg3[%c0_4, %c0_5] : memref<128x128xbf16, #tpu.memory_space<vmem>>, vector<128x128xbf16>
    %cst = arith.constant dense<0.000000e+00> : vector<8x128xf32>
    %6 = tpu.matmul %4, %5, %cst {dimension_numbers = #tpu.dot_dimension_numbers<[1], [0], [0], [1], [0, 0, 1, 1], [], []>} : vector<8x128xbf16>, vector<128x128xbf16>, vector<8x128xf32> -> vector<8x128xf32>
    %7 = arith.addf %3, %6 : vector<8x128xf32>
    %c0_6 = arith.constant 0 : index
    %c0_7 = arith.constant 0 : index
    %8 = vector.load %arg6[%c0_6, %c0_7] : memref<8x128xf32, #tpu.memory_space<vmem>>, vector<8x128xf32>
    tpu.vector_store %arg6[%c0_6, %c0_7], %7 {strides = array<i32>} : memref<8x128xf32, #tpu.memory_space<vmem>>, vector<8x128xf32>,
    %c0_i32_8 = arith.constant 0 : i32
    %9 = arith.cmpi eq, %arg1, %c0_i32_8 : i32
    %10 = arith.extui %9 : i1 to i32
    %c0_i32_9 = arith.constant 0 : i32
    %11 = arith.cmpi ne, %10, %c0_i32_9 : i32
    scf.if %11 {
      %c0_10 = arith.constant 0 : index
      %c0_11 = arith.constant 0 : index
      %12 = vector.load %arg6[%c0_10, %c0_11] : memref<8x128xf32, #tpu.memory_space<vmem>>, vector<8x128xf32>
      %c0_12 = arith.constant 0 : index
      %c0_13 = arith.constant 0 : index
      %13 = vector.load %arg4[%c0_12, %c0_13] : memref<3x128xf32, #tpu.memory_space<vmem>>, vector<1x128xf32>
      %14 = vector.broadcast %13 : vector<1x128xf32> to vector<8x128xf32>
      %15 = arith.addf %12, %14 : vector<8x128xf32>
      %cst_14 = arith.constant dense<0.000000e+00> : vector<128xf32>
      %16 = vector.multi_reduction <add>, %15, %cst_14 [0] : vector<8x128xf32> to vector<128xf32>
      %17 = vector.shape_cast %16 : vector<128xf32> to vector<1x128xf32>
      %cst_15 = arith.constant 8.000000e+00 : f32
      %18 = vector.broadcast %cst_15 : f32 to vector<1x128xf32>
      %19 = arith.divf %17, %18 : vector<1x128xf32>
      %20 = vector.broadcast %19 : vector<1x128xf32> to vector<8x128xf32>
      %21 = arith.subf %15, %20 : vector<8x128xf32>
      %22 = arith.mulf %21, %21 : vector<8x128xf32>
      %cst_16 = arith.constant dense<0.000000e+00> : vector<128xf32>
      %23 = vector.multi_reduction <add>, %22, %cst_16 [0] : vector<8x128xf32> to vector<128xf32>
      %24 = vector.shape_cast %23 : vector<128xf32> to vector<1x128xf32>
      %cst_17 = arith.constant 8.000000e+00 : f32
      %25 = vector.broadcast %cst_17 : f32 to vector<1x128xf32>
      %26 = arith.divf %24, %25 : vector<1x128xf32>
      %c1 = arith.constant 1 : index
      %c0_18 = arith.constant 0 : index
      %27 = vector.load %arg4[%c1, %c0_18] : memref<3x128xf32, #tpu.memory_space<vmem>>, vector<1x128xf32>
      %cst_19 = arith.constant 9.99999974E-6 : f32
      %28 = vector.broadcast %cst_19 : f32 to vector<1x128xf32>
      %29 = arith.addf %26, %28 : vector<1x128xf32>
      %30 = math.rsqrt %29 : vector<1x128xf32>
      %31 = arith.mulf %27, %30 : vector<1x128xf32>
      %c2 = arith.constant 2 : index
      %c0_20 = arith.constant 0 : index
      %32 = vector.load %arg4[%c2, %c0_20] : memref<3x128xf32, #tpu.memory_space<vmem>>, vector<1x128xf32>
      %33 = arith.mulf %19, %31 : vector<1x128xf32>
      %34 = arith.subf %32, %33 : vector<1x128xf32>
      %35 = vector.broadcast %31 : vector<1x128xf32> to vector<8x128xf32>
      %36 = arith.mulf %15, %35 : vector<8x128xf32>
      %37 = vector.broadcast %34 : vector<1x128xf32> to vector<8x128xf32>
      %38 = arith.addf %36, %37 : vector<8x128xf32>
      %cst_21 = arith.constant 0.000000e+00 : f32
      %39 = vector.broadcast %cst_21 : f32 to vector<8x128xf32>
      %40 = arith.maximumf %38, %39 : vector<8x128xf32>
      %41 = arith.truncf %40 : vector<8x128xf32> to vector<8x128xbf16>
      %c0_22 = arith.constant 0 : index
      %c0_23 = arith.constant 0 : index
      %42 = vector.load %arg5[%c0_22, %c0_23] : memref<8x128xbf16, #tpu.memory_space<vmem>>, vector<8x128xbf16>
      tpu.vector_store %arg5[%c0_22, %c0_23], %41 {strides = array<i32>} : memref<8x128xbf16, #tpu.memory_space<vmem>>, vector<8x128xbf16>,
    } else {
    }
    return
  }
  func.func @transform_0(%arg0: i32, %arg1: i32) -> (i32, i32) {
    %c0_i32 = arith.constant 0 : i32
    %c0_i32_0 = arith.constant 0 : i32
    return %c0_i32, %arg1 : i32, i32
  }
  func.func @transform_1(%arg0: i32, %arg1: i32) -> (i32, i32) {
    %c0_i32 = arith.constant 0 : i32
    return %arg1, %arg0 : i32, i32
  }
  func.func @transform_2(%arg0: i32, %arg1: i32) -> (i32, i32) {
    %c0_i32 = arith.constant 0 : i32
    %c0_i32_0 = arith.constant 0 : i32
    return %c0_i32, %arg0 : i32, i32
  }
  func.func @transform_3(%arg0: i32, %arg1: i32) -> (i32, i32) {
    %c0_i32 = arith.constant 0 : i32
    %c0_i32_0 = arith.constant 0 : i32
    return %c0_i32, %arg0 : i32, i32
  }
}

module attributes {stable_mosaic.version = 11 : i64} {
  func.func @_layer_kernel(%arg0: i32, %arg1: i32, %arg2: memref<8x128xbf16, #tpu.memory_space<vmem>>, %arg3: memref<128x128xbf16, #tpu.memory_space<vmem>>, %arg4: memref<3x128xf32, #tpu.memory_space<vmem>>, %arg5: memref<8x128xf32, #tpu.memory_space<vmem>>, %arg6: memref<8x128xf32, #tpu.memory_space<vmem>>) attributes {dimension_semantics = [#tpu.dimension_semantics<parallel>, #tpu.dimension_semantics<arbitrary>], iteration_bounds = array<i64: 1, 1>, scalar_prefetch = 0 : i64, scratch_operands = 1 : i64, tpu.core_type = #tpu.core_type<tc>, window_params = [{transform_indices = @transform_0, window_bounds = array<i64: 8, 128>}, {transform_indices = @transform_1, window_bounds = array<i64: 128, 128>}, {transform_indices = @transform_2, window_bounds = array<i64: 3, 128>}, {transform_indices = @transform_3, window_bounds = array<i64: 8, 128>}]} {
    %c0_i32 = arith.constant 0 : i32
    %0 = arith.cmpi eq, %arg1, %c0_i32 : i32
    %1 = arith.extui %0 : i1 to i32
    %c0_i32_0 = arith.constant 0 : i32
    %2 = arith.cmpi ne, %1, %c0_i32_0 : i32
    scf.if %2 {
      %cst_10 = arith.constant 0.000000e+00 : f32
      %12 = vector.broadcast %cst_10 : f32 to vector<8x128xf32>
      %c0_11 = arith.constant 0 : index
      %c0_12 = arith.constant 0 : index
      %13 = vector.load %arg6[%c0_11, %c0_12] : memref<8x128xf32, #tpu.memory_space<vmem>>, vector<8x128xf32>
      tpu.vector_store %arg6[%c0_11, %c0_12], %12 {strides = array<i32>} : memref<8x128xf32, #tpu.memory_space<vmem>>, vector<8x128xf32>,
    } else {
    }
    %c0 = arith.constant 0 : index
    %c0_1 = arith.constant 0 : index
    %3 = vector.load %arg6[%c0, %c0_1] : memref<8x128xf32, #tpu.memory_space<vmem>>, vector<8x128xf32>
    %c0_2 = arith.constant 0 : index
    %c0_3 = arith.constant 0 : index
    %4 = vector.load %arg2[%c0_2, %c0_3] : memref<8x128xbf16, #tpu.memory_space<vmem>>, vector<8x128xbf16>
    %c0_4 = arith.constant 0 : index
    %c0_5 = arith.constant 0 : index
    %5 = vector.load %arg3[%c0_4, %c0_5] : memref<128x128xbf16, #tpu.memory_space<vmem>>, vector<128x128xbf16>
    %cst = arith.constant dense<0.000000e+00> : vector<8x128xf32>
    %6 = tpu.matmul %4, %5, %cst {dimension_numbers = #tpu.dot_dimension_numbers<[1], [0], [0], [1], [0, 0, 1, 1], [], []>} : vector<8x128xbf16>, vector<128x128xbf16>, vector<8x128xf32> -> vector<8x128xf32>
    %7 = arith.addf %3, %6 : vector<8x128xf32>
    %c0_6 = arith.constant 0 : index
    %c0_7 = arith.constant 0 : index
    %8 = vector.load %arg6[%c0_6, %c0_7] : memref<8x128xf32, #tpu.memory_space<vmem>>, vector<8x128xf32>
    tpu.vector_store %arg6[%c0_6, %c0_7], %7 {strides = array<i32>} : memref<8x128xf32, #tpu.memory_space<vmem>>, vector<8x128xf32>,
    %c0_i32_8 = arith.constant 0 : i32
    %9 = arith.cmpi eq, %arg1, %c0_i32_8 : i32
    %10 = arith.extui %9 : i1 to i32
    %c0_i32_9 = arith.constant 0 : i32
    %11 = arith.cmpi ne, %10, %c0_i32_9 : i32
    scf.if %11 {
      %c0_10 = arith.constant 0 : index
      %c0_11 = arith.constant 0 : index
      %12 = vector.load %arg6[%c0_10, %c0_11] : memref<8x128xf32, #tpu.memory_space<vmem>>, vector<8x128xf32>
      %c0_12 = arith.constant 0 : index
      %c0_13 = arith.constant 0 : index
      %13 = vector.load %arg4[%c0_12, %c0_13] : memref<3x128xf32, #tpu.memory_space<vmem>>, vector<1x128xf32>
      %14 = vector.broadcast %13 : vector<1x128xf32> to vector<8x128xf32>
      %15 = arith.addf %12, %14 : vector<8x128xf32>
      %c0_14 = arith.constant 0 : index
      %c0_15 = arith.constant 0 : index
      %16 = vector.load %arg5[%c0_14, %c0_15] : memref<8x128xf32, #tpu.memory_space<vmem>>, vector<8x128xf32>
      tpu.vector_store %arg5[%c0_14, %c0_15], %15 {strides = array<i32>} : memref<8x128xf32, #tpu.memory_space<vmem>>, vector<8x128xf32>,
    } else {
    }
    return
  }
  func.func @transform_0(%arg0: i32, %arg1: i32) -> (i32, i32) {
    %c0_i32 = arith.constant 0 : i32
    %c0_i32_0 = arith.constant 0 : i32
    return %c0_i32, %arg1 : i32, i32
  }
  func.func @transform_1(%arg0: i32, %arg1: i32) -> (i32, i32) {
    %c0_i32 = arith.constant 0 : i32
    return %arg1, %arg0 : i32, i32
  }
  func.func @transform_2(%arg0: i32, %arg1: i32) -> (i32, i32) {
    %c0_i32 = arith.constant 0 : i32
    %c0_i32_0 = arith.constant 0 : i32
    return %c0_i32, %arg0 : i32, i32
  }
  func.func @transform_3(%arg0: i32, %arg1: i32) -> (i32, i32) {
    %c0_i32 = arith.constant 0 : i32
    %c0_i32_0 = arith.constant 0 : i32
    return %c0_i32, %arg0 : i32, i32
  }
}

</mosaic_0001>

<bundles_post_ra>
// kernel: batch_net_forward.4
= control target key start
LH: loop header
LB: loop body
LE: loop exit
PB: predicated region body
PF: predicated region fallthrough
CT: control target
= control target key end

     0   :  { %v229_v0 = vmov 0.0   ;;  %vm230_vm0 = vmmov 0   ;;  %v162_v33 = vlaneseq  ;;  %s290_s1 = inlined_call_operand.vmem [shape: bf16[128,128], index: 1, kind: input, shape index: {}]   ;;  %s291_s0 = inlined_call_operand.vmem [shape: bf16[8,128], index: 0, kind: input, shape index: {}]   ;;  %s292_s2 = inlined_call_operand.vmem [shape: f32[3,128], index: 2, kind: input, shape index: {}]   ;;  %s293_s3 = inlined_call_operand.vmem [shape: bf16[8,128], index: 3, kind: output, shape index: {}]  }
   0x1   :  { %197 = vmatprep.subr.bf16.mxu0 %v229_v0  ;;  %v219_v1 = vld [vmem:[%s290_s1 + $0x38] sm:$0xff]   ;;  %213 = vmatprep.mubr.msk.bf16.mxu0 %vm230_vm0, %v229_v0  ;;  %v220_v2 = vld [vmem:[%s290_s1 + $0x30] sm:$0xff]   ;;  %v221_v3 = vld [vmem:[%s290_s1 + $0x28] sm:$0xff]  }
   0x2   :  { %198 = vmatpush3.bf16.msra.mxu0 %v219_v1  ;;  %v222_v4 = vld [vmem:[%s290_s1 + $0x20] sm:$0xff]   ;;  %v223_v5 = vld [vmem:[%s290_s1 + $0x18] sm:$0xff]   ;;  %v224_v6 = vld [vmem:[%s290_s1 + $0x10] sm:$0xff]   ;;  %v163_v34 = vshrl.u32 %v162_v33, 7 }
   0x3   :  { %199 = vmatprep.subr.bf16.mxu0 %v229_v0  ;;  %v225_v7 = vld [vmem:[%s290_s1 + $0x8] sm:$0xff]   ;;  %v226_v8 = vld [vmem:[%s290_s1] sm:$0xff]  }
   0x4   :  { %v21_v9 = vld [vmem:[%s291_s0] sm:$0xf]  ;;  %v164_v36 = vsub.s32 0, %v163_v34 }
   0x5   :  { %v187_v10 = vld [vmem:[%s292_s2] ss:$0 sm:$0xff]  ;;  %v155_v35 = vld [vmem:[%s292_s2 + $0x1] sm:$0x1]  ;;  %v159_v39 = vld [vmem:[%s292_s2 + $0x2] sm:$0x1] }
   0x6   :  { %200 = vmatpush3.bf16.msra.mxu0 %v220_v2 }
   0x7   :  { %201 = vmatprep.subr.bf16.mxu0 %v229_v0 }
   0xa   :  { %202 = vmatpush3.bf16.msra.mxu0 %v221_v3 }
   0xb   :  { %203 = vmatprep.subr.bf16.mxu0 %v229_v0 }
   0xe   :  { %204 = vmatpush3.bf16.msra.mxu0 %v222_v4 }
   0xf   :  { %205 = vmatprep.subr.bf16.mxu0 %v229_v0 }
  0x12   :  { %206 = vmatpush3.bf16.msra.mxu0 %v223_v5 }
  0x13   :  { %207 = vmatprep.subr.bf16.mxu0 %v229_v0 }
  0x16   :  { %208 = vmatpush3.bf16.msra.mxu0 %v224_v6 }
  0x17   :  { %209 = vmatprep.subr.bf16.mxu0 %v229_v0 }
  0x1a   :  { %210 = vmatpush3.bf16.msra.mxu0 %v225_v7 }
  0x1b   :  { %211 = vmatprep.subr.bf16.mxu0 %v229_v0 }
  0x1e   :  { %212 = vmatpush3.bf16.msra.mxu0 %v226_v8 }
  0x21   :  { %214 = vmatmul.mubr.bf16.vlgmr.msra.gmra.mxu0 %v21_v9 }
  0xe1   :  { %v120_v11 = vpop.f32.mrf.mxu0 }
  0xe2   :  { %v137_v12 = vadd.f32 %v187_v10, %v120_v11 }
  0xe3   :  { %v215_v13 = vpop.f32.mrf.mxu0 }
  0xe4   :  { %v138_v14 = vrot.slane %v137_v12, 4 }
  0xe5   :  { %v123_v15 = vpop.f32.mrf.mxu0 }
  0xe6   :  { %v139_v16 = vadd.f32 %v138_v14, %v137_v12 }
  0xe7   :  { %v216_v17 = vpop.f32.mrf.mxu0 }
  0xe8   :  { %v140_v18 = vrot.slane %v139_v16, 2 }
  0xea   :  { %v141_v19 = vadd.f32 %v140_v18, %v139_v16 }
  0xec   :  { %v142_v20 = vrot.slane %v141_v19, 1 }
  0xee   :  { %v143_v21 = vadd.f32 %v142_v20, %v141_v19 }
  0xf0   :  { %v145_v22 = vmul.f32 0.125, %v143_v21 }
  0xf2   :  { %v146_v23 = vsub.f32 %v137_v12, %v145_v22 }
  0xf4   :  { %v147_v24 = vmul.f32 %v146_v23, %v146_v23 }
  0xf6   :  { %v148_v25 = vrot.slane %v147_v24, 4 }
  0xf8   :  { %v149_v26 = vadd.f32 %v148_v25, %v147_v24 }
  0xfa   :  { %v150_v27 = vrot.slane %v149_v26, 2 }
  0xfc   :  { %v151_v28 = vadd.f32 %v150_v27, %v149_v26 }
  0xfe   :  { %v152_v29 = vrot.slane %v151_v28, 1 }
 0x100   :  { %v153_v30 = vadd.f32 %v152_v29, %v151_v28 }
 0x102   :  { %v154_v31 = vmul.f32 0.125, %v153_v30 }
 0x104   :  { %v156_v32 = vadd.f32 1e-05, %v154_v31 }
 0x106   :  { %227 = vrsqrt.f32 %v156_v32 }
 0x113   :  { %v228_v37 = vpop.eup %227 }
 0x114   :  { %v158_v38 = vmul.f32 %v228_v37, %v155_v35 }
 0x116   :  { %v160_v40 = vmul.f32 %v158_v38, %v145_v22  ;;  %v165_v41 = vrot.slane %v158_v38, %v164_v36 }
 0x118   :  { %v161_v42 = vsub.f32 %v159_v39, %v160_v40  ;;  %v166_v43 = vmul.f32 %v165_v41, %v137_v12 }
 0x11a   :  { %v170_v44 = vrot.slane %v161_v42, %v164_v36 }
 0x11c   :  { %v171_v45 = vadd.f32 %v170_v44, %v166_v43 }
 0x11e   :  { %v172_v46 = vmax.f32 %v171_v45, 0.0 }
 0x120   :  { %v173_v47 = vpack.c.bf16 %v172_v46, %v172_v46 }
 0x122   :  { %174 = vst [vmem:[%s293_s3] sm:$0xf] %v173_v47 }

// kernel: batch_net_forward.3
= control target key start
LH: loop header
LB: loop body
LE: loop exit
PB: predicated region body
PF: predicated region fallthrough
CT: control target
= control target key end

     0   :  { %8 = vsyncpa [#allocation4], 0  ;;  %s343_s0 = inlined_call_operand.vmem [shape: bf16[8,128], index: 0, kind: input, shape index: {}]   ;;  %s344_s1 = inlined_call_operand.hbm [shape: bf16[128,128], index: 1, kind: input, shape index: {}]   ;;  %s345_s2 = inlined_call_operand.hbm [shape: f32[3,128], index: 2, kind: input, shape index: {}]   ;;  %s346_s3 = inlined_call_operand.vmem [shape: bf16[8,128], index: 3, kind: output, shape index: {}]  }
   0x1   :  { %9 = vsyncpa [#allocation6], 0  ;;  %s305_s12 = smov [#allocation3]  }
   0x2   :  { %s17_s13 = sshll.u32 %s305_s12, 4  ;;  %s18_s13 = int_to_ptr.vmem [resolvable:$true] %s17_s13 }
   0x3   :  { %s269_s14 = scalar_lea.vmem %s18_s13, 1024  ;;  %p274_p1 = scmp.lt.s32.totalorder %s18_s13, %s18_s13 }
   0x4   :  { %p270_p0 = scmp.ne.s32.totalorder %s18_s13, %s269_s14  ;;  %p275_p2 = scmp.lt.s32.totalorder %s269_s14, %s269_s14 }
   0x6   :  { %p276_p3 = por %p275_p2, %p274_p1 }
   0x8   :  { %p277_p4 = pnand %p276_p3, %p270_p0 }
   0xa   :  { %280 = shalt.err (!%p277_p4)
}
   0xb   :  { %s306_s15 = smov 64   ;;  %s307_s16 = smov 4  }
   0xc   :  { %23 = dma.hbm_to_vmem [thread:$0]  %s344_s1, 1024, %s18_s13, [#allocation4], %s306_s15, %s306_s15, %s307_s16  }
   0xd   :  { %s308_s19 = smov [#allocation5]  }
   0xe   :  { %s30_s20 = sshll.u32 %s308_s19, 4  ;;  %s31_s20 = int_to_ptr.vmem [resolvable:$true] %s30_s20 }
   0xf   :  { %s289_s21 = scalar_lea.vmem %s31_s20, 64  ;;  %p294_p6 = scmp.lt.s32.totalorder %s31_s20, %s31_s20 }
  0x10   :  { %p290_p5 = scmp.ne.s32.totalorder %s31_s20, %s289_s21  ;;  %p295_p7 = scmp.lt.s32.totalorder %s289_s21, %s289_s21 }
  0x12   :  { %p296_p8 = por %p295_p7, %p294_p6 }
  0x14   :  { %p297_p9 = pnand %p296_p8, %p290_p5 }
  0x16   :  { %300 = shalt.err (!%p297_p9)
}
  0x17   :  { %33 = dma.hbm_to_vmem [thread:$0]  %s345_s2, 64, %s31_s20, [#allocation6]  }
  0x18   :  { %301 = dma.done.wait [#allocation4], 1024  }
  0x19   :  { %302 = vsyncadd [#allocation4], 4294966272 }
  0x1a   :  { %303 = dma.done.wait [#allocation6], 64  }
  0x1b   :  { %304 = vsyncadd [#allocation6], 4294967232  ;;  %v309_v0 = vmov 0.0   ;;  %vm310_vm0 = vmmov 0   ;;  %v251_v1 = vld [vmem:[#allocation3 + $0x38] sm:$0xff]   ;;  %v252_v2 = vld [vmem:[#allocation3 + $0x30] sm:$0xff]   ;;  %v188_v33 = vlaneseq }
  0x1c   :  { %225 = vmatprep.subr.bf16.mxu0 %v309_v0  ;;  %241 = vmatprep.mubr.msk.bf16.mxu0 %vm310_vm0, %v309_v0  ;;  %v253_v3 = vld [vmem:[#allocation3 + $0x28] sm:$0xff]   ;;  %v254_v4 = vld [vmem:[#allocation3 + $0x20] sm:$0xff]   ;;  %v255_v5 = vld [vmem:[#allocation3 + $0x18] sm:$0xff]  }
  0x1d   :  { %226 = vmatpush3.bf16.msra.mxu0 %v251_v1  ;;  %v256_v6 = vld [vmem:[#allocation3 + $0x10] sm:$0xff]   ;;  %v257_v7 = vld [vmem:[#allocation3 + $0x8] sm:$0xff]   ;;  %v258_v8 = vld [vmem:[#allocation3] sm:$0xff]   ;;  %v189_v34 = vshrl.u32 %v188_v33, 7 }
  0x1e   :  { %227 = vmatprep.subr.bf16.mxu0 %v309_v0  ;;  %v47_v9 = vld [vmem:[%s343_s0] sm:$0xf] }
  0x1f   :  { %v215_v10 = vld [vmem:[#allocation5] ss:$0 sm:$0xff]  ;;  %v181_v35 = vld [vmem:[#allocation5 + $0x1] sm:$0x1]  ;;  %v190_v36 = vsub.s32 0, %v189_v34 }
  0x20   :  { %v185_v39 = vld [vmem:[#allocation5 + $0x2] sm:$0x1] }
  0x21   :  { %228 = vmatpush3.bf16.msra.mxu0 %v252_v2 }
  0x22   :  { %229 = vmatprep.subr.bf16.mxu0 %v309_v0 }
  0x25   :  { %230 = vmatpush3.bf16.msra.mxu0 %v253_v3 }
  0x26   :  { %231 = vmatprep.subr.bf16.mxu0 %v309_v0 }
  0x29   :  { %232 = vmatpush3.bf16.msra.mxu0 %v254_v4 }
  0x2a   :  { %233 = vmatprep.subr.bf16.mxu0 %v309_v0 }
  0x2d   :  { %234 = vmatpush3.bf16.msra.mxu0 %v255_v5 }
  0x2e   :  { %235 = vmatprep.subr.bf16.mxu0 %v309_v0 }
  0x31   :  { %236 = vmatpush3.bf16.msra.mxu0 %v256_v6 }
  0x32   :  { %237 = vmatprep.subr.bf16.mxu0 %v309_v0 }
  0x35   :  { %238 = vmatpush3.bf16.msra.mxu0 %v257_v7 }
  0x36   :  { %239 = vmatprep.subr.bf16.mxu0 %v309_v0 }
  0x39   :  { %240 = vmatpush3.bf16.msra.mxu0 %v258_v8 }
  0x3c   :  { %242 = vmatmul.mubr.bf16.vlgmr.msra.gmra.mxu0 %v47_v9 }
  0xfc   :  { %v146_v11 = vpop.f32.mrf.mxu0 }
  0xfd   :  { %v163_v12 = vadd.f32 %v215_v10, %v146_v11 }
  0xfe   :  { %v243_v13 = vpop.f32.mrf.mxu0 }
  0xff   :  { %v164_v14 = vrot.slane %v163_v12, 4 }
 0x100   :  { %v149_v15 = vpop.f32.mrf.mxu0 }
 0x101   :  { %v165_v16 = vadd.f32 %v164_v14, %v163_v12 }
 0x102   :  { %v244_v17 = vpop.f32.mrf.mxu0 }
 0x103   :  { %v166_v18 = vrot.slane %v165_v16, 2 }
 0x105   :  { %v167_v19 = vadd.f32 %v166_v18, %v165_v16 }
 0x107   :  { %v168_v20 = vrot.slane %v167_v19, 1 }
 0x109   :  { %v169_v21 = vadd.f32 %v168_v20, %v167_v19 }
 0x10b   :  { %v171_v22 = vmul.f32 0.125, %v169_v21 }
 0x10d   :  { %v172_v23 = vsub.f32 %v163_v12, %v171_v22 }
 0x10f   :  { %v173_v24 = vmul.f32 %v172_v23, %v172_v23 }
 0x111   :  { %v174_v25 = vrot.slane %v173_v24, 4 }
 0x113   :  { %v175_v26 = vadd.f32 %v174_v25, %v173_v24 }
 0x115   :  { %v176_v27 = vrot.slane %v175_v26, 2 }
 0x117   :  { %v177_v28 = vadd.f32 %v176_v27, %v175_v26 }
 0x119   :  { %v178_v29 = vrot.slane %v177_v28, 1 }
 0x11b   :  { %v179_v30 = vadd.f32 %v178_v29, %v177_v28 }
 0x11d   :  { %v180_v31 = vmul.f32 0.125, %v179_v30 }
 0x11f   :  { %v182_v32 = vadd.f32 1e-05, %v180_v31 }
 0x121   :  { %259 = vrsqrt.f32 %v182_v32 }
 0x12e   :  { %v260_v37 = vpop.eup %259 }
 0x12f   :  { %v184_v38 = vmul.f32 %v260_v37, %v181_v35 }
 0x131   :  { %v186_v40 = vmul.f32 %v184_v38, %v171_v22  ;;  %v191_v41 = vrot.slane %v184_v38, %v190_v36 }
 0x133   :  { %v187_v42 = vsub.f32 %v185_v39, %v186_v40  ;;  %v192_v43 = vmul.f32 %v191_v41, %v163_v12 }
 0x135   :  { %v196_v44 = vrot.slane %v187_v42, %v190_v36 }
 0x137   :  { %v197_v45 = vadd.f32 %v196_v44, %v192_v43 }
 0x139   :  { %v198_v46 = vmax.f32 %v197_v45, 0.0 }
 0x13b   :  { %v199_v47 = vpack.c.bf16 %v198_v46, %v198_v46 }
 0x13d   :  { %200 = vst [vmem:[%s346_s3] sm:$0xf] %v199_v47 }
 0x13e   :  { %205 = vsyncpa [#allocation4], 1 }
 0x13f   :  { %206 = vsyncpa [#allocation6], 1 }

// kernel: batch_net_forward.5
= control target key start
LH: loop header
LB: loop body
LE: loop exit
PB: predicated region body
PF: predicated region fallthrough
CT: control target
= control target key end

     0   :  { %v225_v1 = vmov 0.0   ;;  %vm226_vm0 = vmmov 0   ;;  %s281_s0 = inlined_call_operand.vmem [shape: bf16[8,128], index: 0, kind: input, shape index: {}]   ;;  %s282_s1 = inlined_call_operand.vmem [shape: bf16[128,128], index: 1, kind: input, shape index: {}]   ;;  %s283_s2 = inlined_call_operand.vmem [shape: f32[3,128], index: 2, kind: input, shape index: {}]   ;;  %s284_s3 = inlined_call_operand.hbm [shape: f32[8,128], index: 3, kind: output, shape index: {}]  }
   0x1   :  { %v195_v0 = vld [vmem:[%s282_s1 + $0x38] sm:$0xff]   ;;  %172 = vmatprep.subr.bf16.mxu0 %v225_v1  ;;  %v196_v2 = vld [vmem:[%s282_s1 + $0x30] sm:$0xff]   ;;  %188 = vmatprep.mubr.msk.bf16.mxu0 %vm226_vm0, %v225_v1  ;;  %v197_v3 = vld [vmem:[%s282_s1 + $0x28] sm:$0xff]  }
   0x2   :  { %173 = vmatpush3.bf16.msra.mxu0 %v195_v0 }
   0x3   :  { %174 = vmatprep.subr.bf16.mxu0 %v225_v1 }
   0x6   :  { %175 = vmatpush3.bf16.msra.mxu0 %v196_v2 }
   0x7   :  { %176 = vmatprep.subr.bf16.mxu0 %v225_v1 }
   0x8   :  { %8 = vsyncpa [#allocation4], 0  ;;  %v198_v4 = vld [vmem:[%s282_s1 + $0x20] sm:$0xff]   ;;  %v199_v5 = vld [vmem:[%s282_s1 + $0x18] sm:$0xff]   ;;  %s227_s5 = smov [#allocation3]  }
   0x9   :  { %v200_v6 = vld [vmem:[%s282_s1 + $0x10] sm:$0xff]   ;;  %v201_v7 = vld [vmem:[%s282_s1 + $0x8] sm:$0xff]   ;;  %v202_v8 = vld [vmem:[%s282_s1] sm:$0xff]   ;;  %s146_s6 = sshll.u32 %s227_s5, 4  ;;  %s147_s6 = int_to_ptr.vmem [resolvable:$true] %s146_s6 }
   0xa   :  { %177 = vmatpush3.bf16.msra.mxu0 %v197_v3  ;;  %v22_v9 = vld [vmem:[%s281_s0] sm:$0xf]  ;;  %s203_s1 = scalar_lea.vmem %s147_s6, 128  ;;  %p208_p1 = scmp.lt.s32.totalorder %s147_s6, %s147_s6 }
   0xb   :  { %178 = vmatprep.subr.bf16.mxu0 %v225_v1  ;;  %v162_v10 = vld [vmem:[%s283_s2] ss:$0 sm:$0xff]  ;;  %p204_p0 = scmp.ne.s32.totalorder %s147_s6, %s203_s1  ;;  %p209_p2 = scmp.lt.s32.totalorder %s203_s1, %s203_s1 }
   0xd   :  { %p210_p3 = por %p209_p2, %p208_p1 }
   0xe   :  { %179 = vmatpush3.bf16.msra.mxu0 %v198_v4 }
   0xf   :  { %180 = vmatprep.subr.bf16.mxu0 %v225_v1  ;;  %p211_p4 = pnand %p210_p3, %p204_p0 }
  0x12   :  { %181 = vmatpush3.bf16.msra.mxu0 %v199_v5 }
  0x13   :  { %182 = vmatprep.subr.bf16.mxu0 %v225_v1 }
  0x16   :  { %183 = vmatpush3.bf16.msra.mxu0 %v200_v6 }
  0x17   :  { %184 = vmatprep.subr.bf16.mxu0 %v225_v1 }
  0x1a   :  { %185 = vmatpush3.bf16.msra.mxu0 %v201_v7 }
  0x1b   :  { %186 = vmatprep.subr.bf16.mxu0 %v225_v1 }
  0x1e   :  { %187 = vmatpush3.bf16.msra.mxu0 %v202_v8 }
  0x21   :  { %189 = vmatmul.mubr.bf16.vlgmr.msra.gmra.mxu0 %v22_v9 }
  0xe1   :  { %v121_v11 = vpop.f32.mrf.mxu0 }
  0xe2   :  { %v138_v12 = vadd.f32 %v162_v10, %v121_v11 }
  0xe3   :  { %v190_v13 = vpop.f32.mrf.mxu0 }
  0xe4   :  { %139 = vst [vmem:[#allocation3] sm:$0xff] %v138_v12 }
  0xe5   :  { %v124_v14 = vpop.f32.mrf.mxu0 }
  0xe6   :  { %214 = shalt.err (!%p211_p4)
}
  0xe7   :  { %149 = dma.vmem_to_hbm [thread:$0]  %s147_s6, 128, %s284_s3, [#allocation4]   ;;  %v191_v15 = vpop.f32.mrf.mxu0 }
  0xe8   :  { %223 = dma.done.wait [#allocation4], 128  }
  0xe9   :  { %224 = vsyncadd [#allocation4], 4294967168 }
  0xea   :  { %153 = vsyncpa [#allocation4], 1 }

</bundles_post_ra>
